<compile_context>
chip_gen: v7x
topology: tpu7x:2x2x1
jax: 0.10.0
libtpu: 0.0.40
codegen_flags: <defaults>
</compile_context>

<pallas_src>
import math
import functools

import jax
import jax.numpy as jnp
from jax import lax
from jax.experimental import pallas as pl
from jax.experimental.pallas import tpu as pltpu


def _round_up(x: int, m: int) -> int:
    return ((x + m - 1) // m) * m


def _cdiv(a: int, b: int) -> int:
    return (a + b - 1) // b


def _device_vmem_bytes() -> int:
    """Per-core VMEM capacity, with a conservative fallback (v7x = 64 MiB)."""
    try:
        return int(pltpu.get_tpu_info().vmem_capacity_bytes)
    except Exception:
        return 64 << 20


def _intermediate_generator_kernel(x_ref, w1_ref, b1_ref, w2_ref, b2_ref, o_ref,
                                   *, wscale: float):
    # --- PixelNorm (f32 statistics); the equalized-lr scale sqrt(2/D) is
    #     folded into the (TB, D) activations (cheaper than scaling DxD W) ---
    x = x_ref[...].astype(jnp.float32)                          # (TB, D)
    ms = jnp.mean(x * x, axis=-1, keepdims=True)                # (TB, 1)
    x = x * (lax.rsqrt(ms + 1e-8) * wscale)

    # --- SLinear 1: weights in storage dtype (bf16 MXU path), f32 accumulate ---
    h = jnp.dot(x.astype(w1_ref.dtype), w1_ref[...],
                preferred_element_type=jnp.float32)
    h = h + b1_ref[...].astype(jnp.float32)
    h = jnp.maximum(h, 0.2 * h)                                 # LeakyReLU(0.2)

    # --- SLinear 2: scale folded into the activations again ---
    h = h * wscale
    h = jnp.dot(h.astype(w2_ref.dtype), w2_ref[...],
                preferred_element_type=jnp.float32)
    h = h + b2_ref[...].astype(jnp.float32)
    h = jnp.maximum(h, 0.2 * h)

    # Single downcast at the final store (one lane-dense vst per tile).
    o_ref[...] = h.astype(o_ref.dtype)


def intermediate_generator(latent_z, w1, b1, w2, b2, *, row_tile=None,
                           mxu_dtype=jnp.bfloat16):
    """latent_z: any shape that squeezes to (B, D). w1/w2: (D_in, D_out). b*: (D,)."""
    x = jnp.squeeze(latent_z)                                   # mirrors .squeeze()
    was_1d = (x.ndim == 1)
    if was_1d:
        x = x[None, :]
    B, D = x.shape

    # Row tile: fewer, fatter tiles.
    #  - small B: one grid step covering the whole batch (rounded to 8 sublanes)
    #  - large B: >=128 rows/tile, split into >=2 steps (v7x dual-TC), cap 512.
    if row_tile is None:
        TB = min(_round_up(B, 8),
                 max(128, _round_up(_cdiv(B, 2), 8)),
                 512)
    else:
        TB = max(8, _round_up(int(row_tile), 8))
    grid = (_cdiv(B, TB),)                                      # partial last block OK

    # Cast the DxD weights to the MXU dtype once here (not per grid step).
    if mxu_dtype is not None:
        w1 = w1.astype(mxu_dtype)
        w2 = w2.astype(mxu_dtype)
    b1_2d = b1.reshape(1, D).astype(jnp.float32)
    b2_2d = b2.reshape(1, D).astype(jnp.float32)

    # VMEM budget: double-buffered x/out tiles + resident weights/biases,
    # plus headroom for in-kernel f32 temporaries; clamp to device capacity.
    act_bytes = 2 * 2 * TB * D * x.dtype.itemsize
    w_bytes = 2 * (w1.size * w1.dtype.itemsize + w2.size * w2.dtype.itemsize)
    scratch_bytes = 4 * TB * D * 4
    want = 2 * (act_bytes + w_bytes + scratch_bytes)
    device_cap = _device_vmem_bytes() - (8 << 20)               # leave headroom
    vmem_limit = int(min(max(want, 16 << 20), max(device_cap, 16 << 20)))

    kernel = functools.partial(_intermediate_generator_kernel,
                               wscale=float(math.sqrt(2.0 / D)))

    out = pl.pallas_call(
        kernel,
        out_shape=jax.ShapeDtypeStruct((B, D), x.dtype),
        grid=grid,
        in_specs=[
            pl.BlockSpec((TB, D), lambda i: (i, 0)),   # x: row-tiled
            pl.BlockSpec((D, D), lambda i: (0, 0)),    # w1: resident
            pl.BlockSpec((1, D), lambda i: (0, 0)),    # b1: resident
            pl.BlockSpec((D, D), lambda i: (0, 0)),    # w2: resident
            pl.BlockSpec((1, D), lambda i: (0, 0)),    # b2: resident
        ],
        out_specs=pl.BlockSpec((TB, D), lambda i: (i, 0)),
        compiler_params=pltpu.CompilerParams(
            dimension_semantics=("parallel",),
            vmem_limit_bytes=vmem_limit,
        ),
    )(x, w1, b1_2d, w2, b2_2d)

    if was_1d:
        out = out[0]
    return out


def _reference(latent_z, w1, b1, w2, b2, mxu_dtype=None):
    """Pure-JAX reference. mxu_dtype=None: exact f32 module semantics.
    mxu_dtype=bf16: mirrors the kernel's MXU rounding for a tight check."""
    x = jnp.squeeze(latent_z).astype(jnp.float32)
    if x.ndim == 1:
        x = x[None, :]
    D = x.shape[-1]
    s = math.sqrt(2.0 / D)
    x = x * lax.rsqrt(jnp.mean(x * x, axis=-1, keepdims=True) + 1e-8)

    def slinear(h, w, b):
        if mxu_dtype is None:
            y = h @ (w.astype(jnp.float32) * s)
        else:
            y = jnp.dot((h * s).astype(mxu_dtype), w.astype(mxu_dtype),
                        preferred_element_type=jnp.float32)
        return y + b.astype(jnp.float32)

    h = slinear(x, w1, b1)
    h = jnp.where(h >= 0, h, 0.2 * h)
    h = slinear(h, w2, b2)
    h = jnp.where(h >= 0, h, 0.2 * h)
    return h


if __name__ == "__main__":
    B, D = 48, 128            # batch, dim_latent (lane-dense D; one fat grid step)
    key = jax.random.PRNGKey(0)
    kz, kw1, kw2, kb1, kb2 = jax.random.split(key, 5)

    # latent_z of shape (B, 1, D) — .squeeze() -> (B, D)
    latent_z = jax.random.normal(kz, (B, 1, D), dtype=jnp.float32)

    # Parameters: nn.Linear weights .normal_(); stored pre-transposed (D_in, D_out)
    # so the kernel computes x @ W. (Module inits bias to zero; nonzero values
    # here just exercise the bias-add path — semantics are identical.)
    w1 = jax.random.normal(kw1, (D, D), dtype=jnp.float32)
    w2 = jax.random.normal(kw2, (D, D), dtype=jnp.float32)
    b1 = 0.1 * jax.random.normal(kb1, (D,), dtype=jnp.float32)
    b2 = 0.1 * jax.random.normal(kb2, (D,), dtype=jnp.float32)

    out = intermediate_generator(latent_z, w1, b1, w2, b2)      # default tiling, bf16 MXU
    out = jax.block_until_ready(out)
    assert out.shape == (B, D)

    # Tight check against a reference that mirrors the kernel's bf16-MXU rounding.
    ref_bf16 = _reference(latent_z, w1, b1, w2, b2, mxu_dtype=jnp.bfloat16)
    assert jnp.allclose(out, ref_bf16, atol=5e-3, rtol=5e-3), "mismatch vs bf16-matched reference"

    # Looser check against the exact f32 module semantics (bf16 MXU rounding only).
    ref_f32 = _reference(latent_z, w1, b1, w2, b2, mxu_dtype=None)
    assert jnp.allclose(out, ref_f32, atol=3e-2, rtol=3e-2), "mismatch vs f32 reference"

    print("KERNEL_OK")
</pallas_src>

<mosaic_0001>
module attributes {stable_mosaic.version = 11 : i64} {
  func.func @_intermediate_generator_kernel(%arg0: i32, %arg1: memref<48x128xf32, #tpu.memory_space<vmem>>, %arg2: memref<128x128xbf16, #tpu.memory_space<vmem>>, %arg3: memref<1x128xf32, #tpu.memory_space<vmem>>, %arg4: memref<128x128xbf16, #tpu.memory_space<vmem>>, %arg5: memref<1x128xf32, #tpu.memory_space<vmem>>, %arg6: memref<48x128xf32, #tpu.memory_space<vmem>>) attributes {dimension_semantics = [#tpu.dimension_semantics<parallel>], iteration_bounds = array<i64: 1>, scalar_prefetch = 0 : i64, scratch_operands = 0 : i64, tpu.core_type = #tpu.core_type<tc>, window_params = [{transform_indices = @transform_0, window_bounds = array<i64: 48, 128>}, {pipeline_mode = #tpu.pipeline_mode<synchronous>, transform_indices = @transform_1, window_bounds = array<i64: 128, 128>}, {pipeline_mode = #tpu.pipeline_mode<synchronous>, transform_indices = @transform_2, window_bounds = array<i64: 1, 128>}, {pipeline_mode = #tpu.pipeline_mode<synchronous>, transform_indices = @transform_3, window_bounds = array<i64: 128, 128>}, {pipeline_mode = #tpu.pipeline_mode<synchronous>, transform_indices = @transform_4, window_bounds = array<i64: 1, 128>}, {transform_indices = @transform_5, window_bounds = array<i64: 48, 128>}]} {
    %c0 = arith.constant 0 : index
    %c0_0 = arith.constant 0 : index
    %0 = vector.load %arg1[%c0, %c0_0] : memref<48x128xf32, #tpu.memory_space<vmem>>, vector<48x128xf32>
    %1 = arith.mulf %0, %0 : vector<48x128xf32>
    %cst = arith.constant dense<0.000000e+00> : vector<48xf32>
    %2 = vector.multi_reduction <add>, %1, %cst [1] : vector<48x128xf32> to vector<48xf32>
    %3 = vector.shape_cast %2 : vector<48xf32> to vector<48x1xf32>
    %cst_1 = arith.constant 1.280000e+02 : f32
    %4 = vector.broadcast %cst_1 : f32 to vector<48x1xf32>
    %5 = arith.divf %3, %4 : vector<48x1xf32>
    %cst_2 = arith.constant 9.99999993E-9 : f32
    %6 = vector.broadcast %cst_2 : f32 to vector<48x1xf32>
    %7 = arith.addf %5, %6 : vector<48x1xf32>
    %8 = math.rsqrt %7 : vector<48x1xf32>
    %cst_3 = arith.constant 1.250000e-01 : f32
    %9 = vector.broadcast %cst_3 : f32 to vector<48x1xf32>
    %10 = arith.mulf %8, %9 : vector<48x1xf32>
    %11 = vector.broadcast %10 : vector<48x1xf32> to vector<48x128xf32>
    %12 = arith.mulf %0, %11 : vector<48x128xf32>
    %13 = arith.truncf %12 : vector<48x128xf32> to vector<48x128xbf16>
    %c0_4 = arith.constant 0 : index
    %c0_5 = arith.constant 0 : index
    %14 = vector.load %arg2[%c0_4, %c0_5] : memref<128x128xbf16, #tpu.memory_space<vmem>>, vector<128x128xbf16>
    %cst_6 = arith.constant dense<0.000000e+00> : vector<48x128xf32>
    %15 = tpu.matmul %13, %14, %cst_6 {dimension_numbers = #tpu.dot_dimension_numbers<[1], [0], [0], [1], [0, 0, 1, 1], [], []>} : vector<48x128xbf16>, vector<128x128xbf16>, vector<48x128xf32> -> vector<48x128xf32>
    %c0_7 = arith.constant 0 : index
    %c0_8 = arith.constant 0 : index
    %16 = vector.load %arg3[%c0_7, %c0_8] : memref<1x128xf32, #tpu.memory_space<vmem>>, vector<1x128xf32>
    %17 = vector.broadcast %16 : vector<1x128xf32> to vector<48x128xf32>
    %18 = arith.addf %15, %17 : vector<48x128xf32>
    %cst_9 = arith.constant 2.000000e-01 : f32
    %19 = vector.broadcast %cst_9 : f32 to vector<48x128xf32>
    %20 = arith.mulf %19, %18 : vector<48x128xf32>
    %21 = arith.maximumf %18, %20 : vector<48x128xf32>
    %cst_10 = arith.constant 1.250000e-01 : f32
    %22 = vector.broadcast %cst_10 : f32 to vector<48x128xf32>
    %23 = arith.mulf %21, %22 : vector<48x128xf32>
    %24 = arith.truncf %23 : vector<48x128xf32> to vector<48x128xbf16>
    %c0_11 = arith.constant 0 : index
    %c0_12 = arith.constant 0 : index
    %25 = vector.load %arg4[%c0_11, %c0_12] : memref<128x128xbf16, #tpu.memory_space<vmem>>, vector<128x128xbf16>
    %cst_13 = arith.constant dense<0.000000e+00> : vector<48x128xf32>
    %26 = tpu.matmul %24, %25, %cst_13 {dimension_numbers = #tpu.dot_dimension_numbers<[1], [0], [0], [1], [0, 0, 1, 1], [], []>} : vector<48x128xbf16>, vector<128x128xbf16>, vector<48x128xf32> -> vector<48x128xf32>
    %c0_14 = arith.constant 0 : index
    %c0_15 = arith.constant 0 : index
    %27 = vector.load %arg5[%c0_14, %c0_15] : memref<1x128xf32, #tpu.memory_space<vmem>>, vector<1x128xf32>
    %28 = vector.broadcast %27 : vector<1x128xf32> to vector<48x128xf32>
    %29 = arith.addf %26, %28 : vector<48x128xf32>
    %cst_16 = arith.constant 2.000000e-01 : f32
    %30 = vector.broadcast %cst_16 : f32 to vector<48x128xf32>
    %31 = arith.mulf %30, %29 : vector<48x128xf32>
    %32 = arith.maximumf %29, %31 : vector<48x128xf32>
    %c0_17 = arith.constant 0 : index
    %c0_18 = arith.constant 0 : index
    %33 = vector.load %arg6[%c0_17, %c0_18] : memref<48x128xf32, #tpu.memory_space<vmem>>, vector<48x128xf32>
    tpu.vector_store %arg6[%c0_17, %c0_18], %32 {strides = array<i32>} : memref<48x128xf32, #tpu.memory_space<vmem>>, vector<48x128xf32>,
    return
  }
  func.func @transform_0(%arg0: i32) -> (i32, i32) {
    %c0_i32 = arith.constant 0 : i32
    %c0_i32_0 = arith.constant 0 : i32
    return %arg0, %c0_i32 : i32, i32
  }
  func.func @transform_1(%arg0: i32) -> (i32, i32) {
    %c0_i32 = arith.constant 0 : i32
    %c0_i32_0 = arith.constant 0 : i32
    %c0_i32_1 = arith.constant 0 : i32
    return %c0_i32, %c0_i32_0 : i32, i32
  }
  func.func @transform_2(%arg0: i32) -> (i32, i32) {
    %c0_i32 = arith.constant 0 : i32
    %c0_i32_0 = arith.constant 0 : i32
    %c0_i32_1 = arith.constant 0 : i32
    return %c0_i32, %c0_i32_0 : i32, i32
  }
  func.func @transform_3(%arg0: i32) -> (i32, i32) {
    %c0_i32 = arith.constant 0 : i32
    %c0_i32_0 = arith.constant 0 : i32
    %c0_i32_1 = arith.constant 0 : i32
    return %c0_i32, %c0_i32_0 : i32, i32
  }
  func.func @transform_4(%arg0: i32) -> (i32, i32) {
    %c0_i32 = arith.constant 0 : i32
    %c0_i32_0 = arith.constant 0 : i32
    %c0_i32_1 = arith.constant 0 : i32
    return %c0_i32, %c0_i32_0 : i32, i32
  }
  func.func @transform_5(%arg0: i32) -> (i32, i32) {
    %c0_i32 = arith.constant 0 : i32
    %c0_i32_0 = arith.constant 0 : i32
    return %arg0, %c0_i32 : i32, i32
  }
}

</mosaic_0001>

<bundles_post_ra>
// kernel: tpu_custom_call.1
= control target key start
LH: loop header
LB: loop body
LE: loop exit
PB: predicated region body
PF: predicated region fallthrough
CT: control target
= control target key end

     0   :  { %10 = vsyncpa [#allocation3], 0  ;;  %s826_s0 = inlined_call_operand.hbm [shape: f32[48,128], index: 0, kind: input, shape index: {}]   ;;  %s827_s1 = inlined_call_operand.hbm [shape: bf16[128,128], index: 1, kind: input, shape index: {}]   ;;  %s828_s2 = inlined_call_operand.vmem [shape: f32[1,128], index: 2, kind: input, shape index: {}]   ;;  %s829_s3 = inlined_call_operand.hbm [shape: bf16[128,128], index: 3, kind: input, shape index: {}]   ;;  %s830_s4 = inlined_call_operand.vmem [shape: f32[1,128], index: 4, kind: input, shape index: {}]   ;;  %s831_s5 = inlined_call_operand.hbm [shape: f32[48,128], index: 5, kind: output, shape index: {}]  }
   0x1   :  { %11 = vsyncpa [#allocation6], 0 }
   0x2   :  { %12 = vsyncpa [#allocation4], 0  ;;  %s662_s18 = smov [#allocation5]   ;;  %s568_s22 = scalar_lea.hbm %s827_s1, 1024 }
   0x3   :  { %s30_s19 = sshll.u32 %s662_s18, 4  ;;  %p569_p0 = scmp.ne.s32.totalorder %s827_s1, %s568_s22  ;;  %s31_s19 = int_to_ptr.vmem [resolvable:$true] %s30_s19 }
   0x4   :  { %p572_p1 = scmp.lt.u32.totalorder %s568_s22, %s827_s1 }
   0x6   :  { %p574_p2 = pnand %p572_p1, %p569_p0 }
   0x8   :  { %577 = shalt.err (!%p574_p2)
}
   0x9   :  { %s578_s27 = scalar_lea.vmem %s31_s19, 1024  ;;  %p583_p4 = scmp.lt.s32.totalorder %s31_s19, %s31_s19 }
   0xa   :  { %p579_p3 = scmp.ne.s32.totalorder %s31_s19, %s578_s27  ;;  %p584_p5 = scmp.lt.s32.totalorder %s578_s27, %s578_s27 }
   0xc   :  { %p585_p6 = por %p584_p5, %p583_p4 }
   0xe   :  { %p586_p7 = pnand %p585_p6, %p579_p3 }
  0x10   :  { %589 = shalt.err (!%p586_p7)
}
  0x11   :  { %s663_s28 = smov 64   ;;  %s664_s29 = smov 4  }
  0x12   :  { %36 = dma.hbm_to_vmem [thread:$0]  %s827_s1, 1024, %s31_s19, [#allocation6], %s663_s28, %s663_s28, %s664_s29  }
  0x13   :  { %s665_s7 = smov [#allocation2]   ;;  %s590_s11 = scalar_lea.hbm %s826_s0, 768 }
  0x14   :  { %s18_s8 = sshll.u32 %s665_s7, 4  ;;  %p591_p8 = scmp.ne.s32.totalorder %s826_s0, %s590_s11  ;;  %s19_s8 = int_to_ptr.vmem [resolvable:$true] %s18_s8 }
  0x15   :  { %p594_p9 = scmp.lt.u32.totalorder %s590_s11, %s826_s0 }
  0x17   :  { %p596_p10 = pnand %p594_p9, %p591_p8 }
  0x19   :  { %599 = shalt.err (!%p596_p10)
}
  0x1a   :  { %s600_s16 = scalar_lea.vmem %s19_s8, 768  ;;  %p605_p12 = scmp.lt.s32.totalorder %s19_s8, %s19_s8 }
  0x1b   :  { %p601_p11 = scmp.ne.s32.totalorder %s19_s8, %s600_s16  ;;  %p606_p13 = scmp.lt.s32.totalorder %s600_s16, %s600_s16 }
  0x1d   :  { %p607_p0 = por %p606_p13, %p605_p12 }
  0x1f   :  { %p608_p1 = pnand %p607_p0, %p601_p11 }
  0x21   :  { %611 = shalt.err (!%p608_p1)
}
  0x22   :  { %s666_s1 = smov 128   ;;  %s667_s17 = smov 8  }
  0x23   :  { %24 = dma.hbm_to_vmem [thread:$0]  %s826_s0, 768, %s19_s8, [#allocation3], %s666_s1, %s666_s1, %s667_s17  }
  0x24   :  { %s668_s20 = smov [#allocation7]   ;;  %s612_s24 = scalar_lea.hbm %s829_s3, 1024 }
  0x25   :  { %s44_s21 = sshll.u32 %s668_s20, 4  ;;  %p613_p2 = scmp.ne.s32.totalorder %s829_s3, %s612_s24  ;;  %s45_s21 = int_to_ptr.vmem [resolvable:$true] %s44_s21 }
  0x26   :  { %p616_p3 = scmp.lt.u32.totalorder %s612_s24, %s829_s3 }
  0x28   :  { %p618_p4 = pnand %p616_p3, %p613_p2 }
  0x2a   :  { %621 = shalt.err (!%p618_p4)
}
  0x2b   :  { %s622_s6 = scalar_lea.vmem %s45_s21, 1024  ;;  %p627_p6 = scmp.lt.s32.totalorder %s45_s21, %s45_s21 }
  0x2c   :  { %p623_p5 = scmp.ne.s32.totalorder %s45_s21, %s622_s6  ;;  %p628_p7 = scmp.lt.s32.totalorder %s622_s6, %s622_s6 }
  0x2e   :  { %p629_p8 = por %p628_p7, %p627_p6 }
  0x30   :  { %p630_p9 = pnand %p629_p8, %p623_p5 }
  0x32   :  { %633 = shalt.err (!%p630_p9)
}
  0x33   :  { %50 = dma.hbm_to_vmem [thread:$0]  %s829_s3, 1024, %s45_s21, [#allocation6], %s663_s28, %s663_s28, %s664_s29  }
  0x34   :  { %656 = dma.done.wait [#allocation3], 768  }
  0x35   :  { %657 = vsyncadd [#allocation3], 4294966528 }
  0x36   :  { %658 = dma.done.wait [#allocation6], 2048  }
  0x37   :  { %659 = vsyncadd [#allocation6], 4294965248  ;;  %v669_v0 = vmov 0.0   ;;  %v749_v1 = vld [vmem:[#allocation2] sm:$0xff]  ;;  %v751_v2 = vld [vmem:[#allocation2 + $0x10] sm:$0xff]  ;;  %vm670_vm0 = vmmov 0  }
  0x38   :  { %474 = vmatprep.subr.bf16.mxu0 %v669_v0  ;;  %502 = vmatprep.subr.bf16.mxu1 %v669_v0  ;;  %v753_v3 = vld [vmem:[#allocation2 + $0x8] sm:$0xff]  ;;  %v69_v4 = vmul.f32 %v749_v1, %v749_v1  ;;  %v71_v5 = vmul.f32 %v751_v2, %v751_v2  ;;  %v759_v6 = vld [vmem:[#allocation2 + $0x18] sm:$0xff]  ;;  %v763_v8 = vld [vmem:[#allocation2 + $0x20] sm:$0xff] }
  0x39   :  { %v761_v7 = vld [vmem:[#allocation2 + $0x28] sm:$0xff]  ;;  %v540_v9 = vld [vmem:[#allocation5] sm:$0xff]   ;;  %v70_v10 = vmul.f32 %v753_v3, %v753_v3  ;;  %v72_v11 = vmul.f32 %v759_v6, %v759_v6  ;;  %v541_v12 = vld [vmem:[#allocation5 + $0x8] sm:$0xff]   ;;  %v73_v14 = vmul.f32 %v763_v8, %v763_v8  ;;  %490 = vmatprep.mubr.msk.bf16.mxu0 %vm670_vm0, %v669_v0  ;;  %518 = vmatprep.mubr.msk.bf16.mxu1 %vm670_vm0, %v669_v0 }
  0x3a   :  { %75 = vadd.xlane.f32.xlu0 %v69_v4  ;;  %79 = vadd.xlane.f32.xlu1 %v71_v5  ;;  %v74_v13 = vmul.f32 %v761_v7, %v761_v7  ;;  %v542_v15 = vld [vmem:[#allocation5 + $0x10] sm:$0xff]   ;;  %v543_v16 = vld [vmem:[#allocation5 + $0x18] sm:$0xff]   ;;  %v544_v17 = vld [vmem:[#allocation5 + $0x20] sm:$0xff]  }
  0x3b   :  { %475 = vmatpush3.bf16.msra.mxu0 %v540_v9  ;;  %v545_v18 = vld [vmem:[#allocation5 + $0x28] sm:$0xff]   ;;  %v546_v19 = vld [vmem:[#allocation5 + $0x30] sm:$0xff]   ;;  %v547_v20 = vld [vmem:[#allocation5 + $0x38] sm:$0xff]  }
  0x3c   :  { %476 = vmatprep.subr.bf16.mxu0 %v669_v0  ;;  %v548_v21 = vld [vmem:[#allocation7] sm:$0xff]   ;;  %v549_v22 = vld [vmem:[#allocation7 + $0x8] sm:$0xff]   ;;  %v550_v23 = vld [vmem:[#allocation7 + $0x10] sm:$0xff]  }
  0x3d   :  { %503 = vmatpush3.bf16.msra.mxu1 %v548_v21  ;;  %v551_v24 = vld [vmem:[#allocation7 + $0x18] sm:$0xff]   ;;  %v552_v25 = vld [vmem:[#allocation7 + $0x20] sm:$0xff]   ;;  %v434_v5 = vld [vmem:[%s828_s2] ss:$0 sm:$0xff] }
  0x3e   :  { %77 = vadd.xlane.f32.xlu0 %v70_v10  ;;  %81 = vadd.xlane.f32.xlu1 %v72_v11  ;;  %v555_v4 = vld [vmem:[#allocation7 + $0x38] sm:$0xff]  }
  0x3f   :  { %477 = vmatpush3.bf16.msra.mxu0 %v541_v12  ;;  %504 = vmatprep.subr.bf16.mxu1 %v669_v0 }
  0x40   :  { %478 = vmatprep.subr.bf16.mxu0 %v669_v0 }
  0x41   :  { %505 = vmatpush3.bf16.msra.mxu1 %v549_v22 }
  0x42   :  { %85 = vadd.xlane.f32.xlu1 %v74_v13  ;;  %83 = vadd.xlane.f32.xlu0 %v73_v14 }
  0x43   :  { %479 = vmatpush3.bf16.msra.mxu0 %v542_v15  ;;  %506 = vmatprep.subr.bf16.mxu1 %v669_v0 }
  0x44   :  { %480 = vmatprep.subr.bf16.mxu0 %v669_v0 }
  0x45   :  { %507 = vmatpush3.bf16.msra.mxu1 %v550_v23 }
  0x46   :  { %508 = vmatprep.subr.bf16.mxu1 %v669_v0 }
  0x47   :  { %481 = vmatpush3.bf16.msra.mxu0 %v543_v16 }
  0x48   :  { %482 = vmatprep.subr.bf16.mxu0 %v669_v0 }
  0x49   :  { %509 = vmatpush3.bf16.msra.mxu1 %v551_v24 }
  0x4a   :  { %510 = vmatprep.subr.bf16.mxu1 %v669_v0 }
  0x4b   :  { %483 = vmatpush3.bf16.msra.mxu0 %v544_v17 }
  0x4c   :  { %484 = vmatprep.subr.bf16.mxu0 %v669_v0 }
  0x4d   :  { %511 = vmatpush3.bf16.msra.mxu1 %v552_v25 }
  0x4e   :  { %512 = vmatprep.subr.bf16.mxu1 %v669_v0 }
  0x4f   :  { %485 = vmatpush3.bf16.msra.mxu0 %v545_v18 }
  0x50   :  { %486 = vmatprep.subr.bf16.mxu0 %v669_v0 }
  0x53   :  { %487 = vmatpush3.bf16.msra.mxu0 %v546_v19 }
  0x54   :  { %488 = vmatprep.subr.bf16.mxu0 %v669_v0 }
  0x57   :  { %489 = vmatpush3.bf16.msra.mxu0 %v547_v20 }
  0xc7   :  { %v76_v26 = vpop.xlane.xlu0 %75  ;;  %v80_v27 = vpop.xlane.xlu1 %79 }
  0xc8   :  { %v88_v28 = vmul.f32 0.0078125, %v76_v26  ;;  %v90_v29 = vmul.f32 0.0078125, %v80_v27 }
  0xca   :  { %v94_v30 = vadd.f32 1e-08, %v88_v28  ;;  %v96_v35 = vadd.f32 1e-08, %v90_v29 }
  0xcb   :  { %v78_v31 = vpop.xlane.xlu0 %77  ;;  %v82_v32 = vpop.xlane.xlu1 %81 }
  0xcc   :  { %556 = vrsqrt.f32 %v94_v30  ;;  %v89_v33 = vmul.f32 0.0078125, %v78_v31  ;;  %v91_v34 = vmul.f32 0.0078125, %v82_v32 }
  0xce   :  { %v95_v36 = vadd.f32 1e-08, %v89_v33  ;;  %v97_v37 = vadd.f32 1e-08, %v91_v34 }
  0xcf   :  { %v86_v38 = vpop.xlane.xlu1 %85  ;;  %v84_v39 = vpop.xlane.xlu0 %83 }
  0xd0   :  { %558 = vrsqrt.f32 %v95_v36  ;;  %v93_v40 = vmul.f32 0.0078125, %v86_v38  ;;  %v92_v41 = vmul.f32 0.0078125, %v84_v39 }
  0xd1   :  { %560 = vrsqrt.f32 %v96_v35 }
  0xd2   :  { %562 = vrsqrt.f32 %v97_v37  ;;  %v99_v42 = vadd.f32 1e-08, %v93_v40  ;;  %v98_v43 = vadd.f32 1e-08, %v92_v41 }
  0xd4   :  { %564 = vrsqrt.f32 %v99_v42 }
  0xd5   :  { %566 = vrsqrt.f32 %v98_v43 }
  0xd6   :  { %v557_v44 = vpop.eup %556 }
  0xd7   :  { %v106_v45 = vmul.f32 0.125, %v557_v44 }
  0xd9   :  { %v112_v50 = vmul.f32 %v106_v45, %v749_v1  ;;  %v443_v45 = vld [vmem:[%s830_s4] ss:$0 sm:$0xff]  ;;  %s671_s4 = smov [#allocation8]  }
  0xda   :  { %v559_v46 = vpop.eup %558  ;;  %s421_s8 = sshll.u32 %s671_s4, 4  ;;  %s422_s8 = int_to_ptr.vmem [resolvable:$true] %s421_s8 }
  0xdb   :  { %v561_v47 = vpop.eup %560  ;;  %v107_v48 = vmul.f32 0.125, %v559_v46  ;;  %s634_s9 = scalar_lea.vmem %s422_s8, 768  ;;  %p639_p11 = scmp.lt.s32.totalorder %s422_s8, %s422_s8 }
  0xdc   :  { %v563_v49 = vpop.eup %562  ;;  %v108_v52 = vmul.f32 0.125, %v561_v47  ;;  %p635_p10 = scmp.ne.s32.totalorder %s422_s8, %s634_s9  ;;  %p640_p12 = scmp.lt.s32.totalorder %s634_s9, %s634_s9 }
  0xdd   :  { %v113_v51 = vmul.f32 %v107_v48, %v753_v3  ;;  %v109_v53 = vmul.f32 0.125, %v563_v49  ;;  %v553_v3 = vld [vmem:[#allocation7 + $0x28] sm:$0xff]  }
  0xde   :  { %v565_v55 = vpop.eup %564  ;;  %v114_v57 = vmul.f32 %v108_v52, %v751_v2  ;;  %513 = vmatpush3.bf16.msra.mxu1 %v553_v3  ;;  %v554_v2 = vld [vmem:[#allocation7 + $0x30] sm:$0xff]   ;;  %p641_p13 = por %p640_p12, %p639_p11 }
  0xdf   :  { %v118_v54 = vpack.c.bf16 %v113_v51, %v112_v50  ;;  %v567_v56 = vpop.eup %566  ;;  %v115_v58 = vmul.f32 %v109_v53, %v759_v6  ;;  %v111_v59 = vmul.f32 0.125, %v565_v55  ;;  %514 = vmatprep.subr.bf16.mxu1 %v669_v0 }
  0xe0   :  { %v110_v60 = vmul.f32 0.125, %v567_v56  ;;  %p642_p0 = pnand %p641_p13, %p635_p10 }
  0xe1   :  { %491 = vmatmul.mubr.bf16.vlgmr.msra.gmra.mrb[0].mxu0 %v118_v54  ;;  %v119_v61 = vpack.c.bf16 %v115_v58, %v114_v57  ;;  %v117_v62 = vmul.f32 %v111_v59, %v761_v7 }
  0xe2   :  { %494 = vmatprep.mubr.msk.bf16.mxu0 %vm670_vm0, %v669_v0  ;;  %v116_v63 = vmul.f32 %v110_v60, %v763_v8  ;;  %515 = vmatpush3.bf16.msra.mxu1 %v554_v2 }
  0xe3   :  { %516 = vmatprep.subr.bf16.mxu1 %v669_v0 }
  0xe4   :  { %v120_v1 = vpack.c.bf16 %v117_v62, %v116_v63 }
  0xe6   :  { %517 = vmatpush3.bf16.msra.mxu1 %v555_v4 }
  0xe9   :  { %495 = vmatmul.mubr.bf16.gmra.mrb[4].mxu0 %v119_v61 }
  0xea   :  { %498 = vmatprep.mubr.msk.bf16.mxu0 %vm670_vm0, %v669_v0 }
  0xf1   :  { %499 = vmatmul.mubr.bf16.gmra.mrb[8].mxu0 %v120_v1 }
 0x1b4   :  { %v226_v6 = vpop.f32.mrb[0].mxu0 }
 0x1b5   :  { %v227_v7 = vadd.f32 %v434_v5, %v226_v6  ;;  %v492_v8 = vpop.f32.mrb[1].mxu0 }
 0x1b6   :  { %v229_v9 = vpop.f32.mrb[2].mxu0 }
 0x1b7   :  { %v249_v10 = vmul.f32 0.2, %v227_v7  ;;  %v230_v11 = vadd.f32 %v434_v5, %v229_v9  ;;  %v493_v12 = vpop.f32.mrb[3].mxu0 }
 0x1b9   :  { %v255_v13 = vmax.f32 %v227_v7, %v249_v10  ;;  %v250_v14 = vmul.f32 0.2, %v230_v11 }
 0x1bb   :  { %v256_v15 = vmax.f32 %v230_v11, %v250_v14  ;;  %v261_v17 = vmul.f32 0.125, %v255_v13 }
 0x1bc   :  { %v234_v16 = vpop.f32.mrb[4].mxu0 }
 0x1bd   :  { %v262_v18 = vmul.f32 0.125, %v256_v15  ;;  %v235_v19 = vadd.f32 %v434_v5, %v234_v16  ;;  %v496_v20 = vpop.f32.mrb[5].mxu0 }
 0x1be   :  { %v237_v21 = vpop.f32.mrb[6].mxu0 }
 0x1bf   :  { %v251_v22 = vmul.f32 0.2, %v235_v19  ;;  %v238_v23 = vadd.f32 %v434_v5, %v237_v21  ;;  %v497_v24 = vpop.f32.mrb[7].mxu0  ;;  %v267_v25 = vpack.c.bf16 %v262_v18, %v261_v17 }
 0x1c1   :  { %v257_v26 = vmax.f32 %v235_v19, %v251_v22  ;;  %v252_v27 = vmul.f32 0.2, %v238_v23  ;;  %519 = vmatmul.mubr.bf16.vlgmr.msra.gmra.mrb[0].mxu1 %v267_v25 }
 0x1c2   :  { %522 = vmatprep.mubr.msk.bf16.mxu1 %vm670_vm0, %v669_v0 }
 0x1c3   :  { %v258_v28 = vmax.f32 %v238_v23, %v252_v27  ;;  %v263_v30 = vmul.f32 0.125, %v257_v26 }
 0x1c4   :  { %v242_v29 = vpop.f32.mrb[8].mxu0 }
 0x1c5   :  { %v264_v31 = vmul.f32 0.125, %v258_v28  ;;  %v243_v32 = vadd.f32 %v434_v5, %v242_v29  ;;  %v500_v33 = vpop.f32.mrb[9].mxu0 }
 0x1c6   :  { %v245_v34 = vpop.f32.mrb[10].mxu0 }
 0x1c7   :  { %v253_v35 = vmul.f32 0.2, %v243_v32  ;;  %v246_v36 = vadd.f32 %v434_v5, %v245_v34  ;;  %v501_v37 = vpop.f32.mrb[11].mxu0  ;;  %v268_v38 = vpack.c.bf16 %v264_v31, %v263_v30 }
 0x1c9   :  { %v259_v39 = vmax.f32 %v243_v32, %v253_v35  ;;  %v254_v40 = vmul.f32 0.2, %v246_v36  ;;  %523 = vmatmul.mubr.bf16.gmra.mrb[4].mxu1 %v268_v38 }
 0x1ca   :  { %526 = vmatprep.mubr.msk.bf16.mxu1 %vm670_vm0, %v669_v0 }
 0x1cb   :  { %v260_v41 = vmax.f32 %v246_v36, %v254_v40  ;;  %v265_v42 = vmul.f32 0.125, %v259_v39 }
 0x1cd   :  { %v266_v43 = vmul.f32 0.125, %v260_v41 }
 0x1cf   :  { %v269_v44 = vpack.c.bf16 %v266_v43, %v265_v42 }
 0x1d1   :  { %527 = vmatmul.mubr.bf16.gmra.mrb[8].mxu1 %v269_v44 }
 0x294   :  { %v375_v46 = vpop.f32.mrb[0].mxu1 }
 0x295   :  { %v376_v47 = vadd.f32 %v443_v45, %v375_v46  ;;  %v520_v48 = vpop.f32.mrb[1].mxu1 }
 0x296   :  { %v378_v49 = vpop.f32.mrb[2].mxu1 }
 0x297   :  { %v398_v50 = vmul.f32 0.2, %v376_v47  ;;  %v379_v51 = vadd.f32 %v443_v45, %v378_v49  ;;  %v521_v52 = vpop.f32.mrb[3].mxu1 }
 0x299   :  { %v404_v53 = vmax.f32 %v376_v47, %v398_v50  ;;  %v399_v54 = vmul.f32 0.2, %v379_v51 }
 0x29b   :  { %410 = vst [vmem:[#allocation8] sm:$0xff] %v404_v53  ;;  %v405_v0 = vmax.f32 %v379_v51, %v399_v54 }
 0x29c   :  { %v383_v55 = vpop.f32.mrb[4].mxu1 }
 0x29d   :  { %411 = vst [vmem:[#allocation8 + $0x8] sm:$0xff] %v405_v0  ;;  %v384_v56 = vadd.f32 %v443_v45, %v383_v55  ;;  %v524_v57 = vpop.f32.mrb[5].mxu1 }
 0x29e   :  { %v386_v58 = vpop.f32.mrb[6].mxu1 }
 0x29f   :  { %v400_v59 = vmul.f32 0.2, %v384_v56  ;;  %v387_v60 = vadd.f32 %v443_v45, %v386_v58  ;;  %v525_v61 = vpop.f32.mrb[7].mxu1 }
 0x2a1   :  { %v406_v62 = vmax.f32 %v384_v56, %v400_v59  ;;  %v401_v63 = vmul.f32 0.2, %v387_v60 }
 0x2a3   :  { %412 = vst [vmem:[#allocation8 + $0x10] sm:$0xff] %v406_v62  ;;  %v407_v1 = vmax.f32 %v387_v60, %v401_v63 }
 0x2a4   :  { %v391_v3 = vpop.f32.mrb[8].mxu1 }
 0x2a5   :  { %413 = vst [vmem:[#allocation8 + $0x18] sm:$0xff] %v407_v1  ;;  %v392_v2 = vadd.f32 %v443_v45, %v391_v3  ;;  %v528_v4 = vpop.f32.mrb[9].mxu1 }
 0x2a6   :  { %v394_v5 = vpop.f32.mrb[10].mxu1 }
 0x2a7   :  { %v402_v6 = vmul.f32 0.2, %v392_v2  ;;  %v395_v7 = vadd.f32 %v443_v45, %v394_v5  ;;  %v529_v8 = vpop.f32.mrb[11].mxu1 }
 0x2a9   :  { %v408_v9 = vmax.f32 %v392_v2, %v402_v6  ;;  %v403_v10 = vmul.f32 0.2, %v395_v7 }
 0x2ab   :  { %414 = vst [vmem:[#allocation8 + $0x20] sm:$0xff] %v408_v9  ;;  %v409_v11 = vmax.f32 %v395_v7, %v403_v10 }
 0x2ad   :  { %415 = vst [vmem:[#allocation8 + $0x28] sm:$0xff] %v409_v11 }
 0x2ae   :  { %645 = shalt.err (!%p642_p0)
}
 0x2af   :  { %s646_s12 = scalar_lea.hbm %s831_s5, 768 }
 0x2b0   :  { %p647_p1 = scmp.ne.s32.totalorder %s831_s5, %s646_s12  ;;  %p650_p2 = scmp.lt.u32.totalorder %s646_s12, %s831_s5 }
 0x2b2   :  { %p652_p3 = pnand %p650_p2, %p647_p1 }
 0x2b4   :  { %655 = shalt.err (!%p652_p3)
}
 0x2b5   :  { %427 = dma.vmem_to_hbm [thread:$0]  %s422_s8, 768, %s831_s5, [#allocation4], %s666_s1, %s666_s1, %s667_s17  }
 0x2b6   :  { %660 = dma.done.wait [#allocation4], 768  }
 0x2b7   :  { %661 = vsyncadd [#allocation4], 4294966528 }
 0x2b8   :  { %431 = vsyncpa [#allocation3], 1 }
 0x2b9   :  { %432 = vsyncpa [#allocation6], 1 }
 0x2ba   :  { %433 = vsyncpa [#allocation4], 1 }

</bundles_post_ra>
